<compile_context>
chip_gen: v7x
topology: tpu7x:2x2x1
jax: 0.10.0
libtpu: 0.0.40
codegen_flags: <defaults>
</compile_context>

<pallas_src>
import functools

import jax
import jax.numpy as jnp
from jax.experimental import pallas as pl
from jax.experimental.pallas import tpu as pltpu

# Layer widths, mirroring the nn.Module __init__.
ENC_DIMS = [64, 32, 16, 8, 4]
DEC_DIMS = [4, 8, 16, 32, 64]
LAYER_DIMS = list(zip(ENC_DIMS[:-1], ENC_DIMS[1:])) + \
             list(zip(DEC_DIMS[:-1], DEC_DIMS[1:]))   # (fan_in, fan_out) per layer
N_LAYERS = len(LAYER_DIMS)            # 8
LAST_ENC_LAYER = len(ENC_DIMS) - 2    # index 3: latent layer, no activation after it
MAX_FEAT = 64
IN_DIM = ENC_DIMS[0]                  # 64
OUT_DIM = DEC_DIMS[-1]                # 64

TM_MAX = 8192                         # max batch tile (lane axis)
ALIGN = 512                           # batch-tile granularity


def autoencoder_kernel(x_ref, w_ref, b_ref, out_ref):
    """Feature-major MLP chain; batch rides the lane axis.

    x_ref:   (64, TM)    bf16  batch tile, batch on lanes
    w_ref:   (8, 64, 64) bf16  layer i weight (out,in) zero-padded into [i, :out, :in]
    b_ref:   (64, 8)     f32   layer i bias zero-padded into [:out, i]
    out_ref: (64, TM)    f32   lane-dense output slab
    """
    h = x_ref[...]                                     # bf16 (in, TM)
    for i, (fin, fout) in enumerate(LAYER_DIMS):
        w = w_ref[i, :fout, :fin]                      # bf16 (out, in), static slice
        b = b_ref[:fout, i:i + 1]                      # f32  (out, 1)
        # bf16 MXU operands, f32 accumulation; elementwise stays f32 (v5e-safe).
        acc = jnp.dot(w, h, preferred_element_type=jnp.float32) + b   # (out, TM)
        if i == N_LAYERS - 1:
            # sigmoid(x) = 1/(1+exp(-x)): exp on EUP, divide via approx EUP reciprocal.
            out_ref[...] = pl.reciprocal(1.0 + jnp.exp(-acc),
                                         approx=True).astype(out_ref.dtype)
        elif i == LAST_ENC_LAYER:
            h = acc.astype(jnp.bfloat16)               # latent layer: no activation
        else:
            h = jnp.maximum(acc, 0.0).astype(jnp.bfloat16)


def _round_up(x, m):
    return ((x + m - 1) // m) * m


def _pick_tiling(batch):
    """Choose (tm, n_tiles, padded) for the batch/lane axis.

    Big tiles (<= TM_MAX) to amortize the ~0.35us per-grid-step overhead, but
    keep >= 2 tiles when the batch allows it so v7x's two TensorCores both get
    work via the 'parallel' dimension semantics.
    """
    padded = _round_up(batch, ALIGN)
    n_tiles = max(1, pl.cdiv(padded, TM_MAX))
    if padded >= 2 * ALIGN:
        n_tiles = max(n_tiles, 2)
    tm = _round_up(pl.cdiv(padded, n_tiles), ALIGN)
    n_tiles = pl.cdiv(padded, tm)
    return tm, n_tiles, n_tiles * tm


@jax.jit
def autoencoder_forward(x, params):
    """x: (batch, 64) float32. params: list of (W (out,in) f32, b (out,) f32)."""
    batch, feat = x.shape
    assert feat == IN_DIM, feat

    tm, n_tiles, padded = _pick_tiling(batch)

    # Layout plumbing (fused by XLA into a single copy): feature-major transpose
    # + bf16 cast of the MXU operand + pad the lane axis to a whole tile count.
    xT = x.T.astype(jnp.bfloat16)                      # (64, batch)
    if padded != batch:
        xT = jnp.pad(xT, ((0, 0), (0, padded - batch)))

    # Pack the 16 weight/bias operands into one bf16 weight slab + one f32 bias
    # slab (zero-padded); the kernel slices them with static offsets.
    w_slab = jnp.zeros((N_LAYERS, MAX_FEAT, MAX_FEAT), jnp.bfloat16)
    b_slab = jnp.zeros((MAX_FEAT, N_LAYERS), jnp.float32)
    for i, (w, b) in enumerate(params):
        fout, fin = w.shape
        w_slab = w_slab.at[i, :fout, :fin].set(w.astype(jnp.bfloat16))
        b_slab = b_slab.at[:fout, i].set(b.astype(jnp.float32))

    in_specs = [
        pl.BlockSpec((IN_DIM, tm), lambda i: (0, i)),        # batch-tiled input
        pl.BlockSpec(w_slab.shape, lambda i: (0, 0, 0)),     # VMEM-resident weights
        pl.BlockSpec(b_slab.shape, lambda i: (0, 0)),        # VMEM-resident biases
    ]
    out_spec = pl.BlockSpec((OUT_DIM, tm), lambda i: (0, i))  # lane-dense output slab

    flops = 2 * padded * sum(fi * fo for fi, fo in LAYER_DIMS)
    bytes_accessed = (xT.size * xT.dtype.itemsize            # bf16 input
                      + padded * OUT_DIM * 4                 # f32 output
                      + w_slab.size * 2 + b_slab.size * 4)   # params (once)
    cost = pl.CostEstimate(flops=flops,
                           transcendentals=padded * OUT_DIM,  # sigmoid exps
                           bytes_accessed=bytes_accessed)

    out = pl.pallas_call(
        autoencoder_kernel,
        out_shape=jax.ShapeDtypeStruct((OUT_DIM, padded), jnp.float32),
        grid=(n_tiles,),
        in_specs=in_specs,
        out_specs=out_spec,
        compiler_params=pltpu.CompilerParams(
            dimension_semantics=("parallel",),
            vmem_limit_bytes=32 * 1024 * 1024,
        ),
        cost_estimate=cost,
    )(xT, w_slab, b_slab)

    return out[:, :batch].T                                   # back to (batch, 64)


def init_params(key):
    """Deterministic init mimicking PyTorch Linear (uniform +/- 1/sqrt(fan_in)).
    Weights stored in PyTorch-native (out_features, in_features) layout."""
    params = []
    for fan_in, fan_out in LAYER_DIMS:
        key, kw, kb = jax.random.split(key, 3)
        bound = float(fan_in) ** -0.5
        w = jax.random.uniform(kw, (fan_out, fan_in), jnp.float32,
                               minval=-bound, maxval=bound)
        b = jax.random.uniform(kb, (fan_out,), jnp.float32,
                               minval=-bound, maxval=bound)
        params.append((w, b))
    return params


def reference_forward(x, params, *, use_bf16_matmul):
    """Plain-JAX reference of the same forward pass (batch-major)."""
    h = x.astype(jnp.float32)
    for i, (w, b) in enumerate(params):
        if use_bf16_matmul:
            h = jnp.dot(h.astype(jnp.bfloat16), w.T.astype(jnp.bfloat16),
                        preferred_element_type=jnp.float32) + b
        else:
            h = h @ w.T + b
        if i == N_LAYERS - 1:
            h = jax.nn.sigmoid(h)
        elif i != LAST_ENC_LAYER:
            h = jnp.maximum(h, 0.0)
    return h


if __name__ == "__main__":
    key = jax.random.PRNGKey(0)
    kx, kp = jax.random.split(key)
    params = init_params(kp)

    # batch=300 -> single tile (with padding); batch=1300 -> 2 tiles (exercises the
    # pipelined grid and the >=2-tiles-for-v7x path).
    for batch in (300, 1300):
        kx, kb = jax.random.split(kx)
        x = jax.random.uniform(kb, (batch, 8 * 8), jnp.float32)  # flattened 8x8 images

        out = jax.block_until_ready(autoencoder_forward(x, params))
        assert out.shape == (batch, OUT_DIM), out.shape

        # Matching-path reference (bf16 MXU operands, f32 accumulate, exact sigmoid).
        ref_bf16 = reference_forward(x, params, use_bf16_matmul=True)
        err = float(jnp.max(jnp.abs(out - ref_bf16)))
        assert err < 5e-3, f"batch={batch}: max err vs bf16 ref {err}"

        # Full-f32 reference -> looser sanity check on the bf16 approximation.
        ref_f32 = reference_forward(x, params, use_bf16_matmul=False)
        err32 = float(jnp.max(jnp.abs(out - ref_f32)))
        assert err32 < 5e-2, f"batch={batch}: max err vs f32 ref {err32}"

    print("KERNEL_OK")
</pallas_src>

<mosaic_0001>
module attributes {stable_mosaic.version = 11 : i64} {
  func.func @autoencoder_kernel(%arg0: i32, %arg1: memref<64x512xbf16, #tpu.memory_space<vmem>>, %arg2: memref<8x64x64xbf16, #tpu.memory_space<vmem>>, %arg3: memref<64x8xf32, #tpu.memory_space<vmem>>, %arg4: memref<64x512xf32, #tpu.memory_space<vmem>>) attributes {dimension_semantics = [#tpu.dimension_semantics<parallel>], iteration_bounds = array<i64: 1>, scalar_prefetch = 0 : i64, scratch_operands = 0 : i64, tpu.core_type = #tpu.core_type<tc>, window_params = [{transform_indices = @transform_0, window_bounds = array<i64: 64, 512>}, {pipeline_mode = #tpu.pipeline_mode<synchronous>, transform_indices = @transform_1, window_bounds = array<i64: 8, 64, 64>}, {pipeline_mode = #tpu.pipeline_mode<synchronous>, transform_indices = @transform_2, window_bounds = array<i64: 64, 8>}, {transform_indices = @transform_3, window_bounds = array<i64: 64, 512>}]} {
    %c0 = arith.constant 0 : index
    %c0_0 = arith.constant 0 : index
    %0 = vector.load %arg1[%c0, %c0_0] : memref<64x512xbf16, #tpu.memory_space<vmem>>, vector<64x512xbf16>
    %c0_1 = arith.constant 0 : index
    %c0_2 = arith.constant 0 : index
    %c0_3 = arith.constant 0 : index
    %1 = vector.load %arg2[%c0_1, %c0_2, %c0_3] : memref<8x64x64xbf16, #tpu.memory_space<vmem>>, vector<1x32x64xbf16>
    %2 = vector.shape_cast %1 : vector<1x32x64xbf16> to vector<32x64xbf16>
    %c0_4 = arith.constant 0 : index
    %c0_5 = arith.constant 0 : index
    %3 = vector.load %arg3[%c0_4, %c0_5] : memref<64x8xf32, #tpu.memory_space<vmem>>, vector<32x1xf32>
    %cst = arith.constant dense<0.000000e+00> : vector<32x512xf32>
    %4 = tpu.matmul %2, %0, %cst {dimension_numbers = #tpu.dot_dimension_numbers<[1], [0], [0], [1], [0, 0, 1, 1], [], []>} : vector<32x64xbf16>, vector<64x512xbf16>, vector<32x512xf32> -> vector<32x512xf32>
    %5 = vector.broadcast %3 : vector<32x1xf32> to vector<32x512xf32>
    %6 = arith.addf %4, %5 : vector<32x512xf32>
    %cst_6 = arith.constant 0.000000e+00 : f32
    %7 = vector.broadcast %cst_6 : f32 to vector<32x512xf32>
    %8 = arith.maximumf %6, %7 : vector<32x512xf32>
    %9 = arith.truncf %8 : vector<32x512xf32> to vector<32x512xbf16>
    %c1 = arith.constant 1 : index
    %c0_7 = arith.constant 0 : index
    %c0_8 = arith.constant 0 : index
    %10 = vector.load %arg2[%c1, %c0_7, %c0_8] : memref<8x64x64xbf16, #tpu.memory_space<vmem>>, vector<1x16x32xbf16>
    %11 = vector.shape_cast %10 : vector<1x16x32xbf16> to vector<16x32xbf16>
    %c0_9 = arith.constant 0 : index
    %c1_10 = arith.constant 1 : index
    %12 = vector.load %arg3[%c0_9, %c1_10] : memref<64x8xf32, #tpu.memory_space<vmem>>, vector<16x1xf32>
    %cst_11 = arith.constant dense<0.000000e+00> : vector<16x512xf32>
    %13 = tpu.matmul %11, %9, %cst_11 {dimension_numbers = #tpu.dot_dimension_numbers<[1], [0], [0], [1], [0, 0, 1, 1], [], []>} : vector<16x32xbf16>, vector<32x512xbf16>, vector<16x512xf32> -> vector<16x512xf32>
    %14 = vector.broadcast %12 : vector<16x1xf32> to vector<16x512xf32>
    %15 = arith.addf %13, %14 : vector<16x512xf32>
    %cst_12 = arith.constant 0.000000e+00 : f32
    %16 = vector.broadcast %cst_12 : f32 to vector<16x512xf32>
    %17 = arith.maximumf %15, %16 : vector<16x512xf32>
    %18 = arith.truncf %17 : vector<16x512xf32> to vector<16x512xbf16>
    %c2 = arith.constant 2 : index
    %c0_13 = arith.constant 0 : index
    %c0_14 = arith.constant 0 : index
    %19 = vector.load %arg2[%c2, %c0_13, %c0_14] : memref<8x64x64xbf16, #tpu.memory_space<vmem>>, vector<1x8x16xbf16>
    %20 = vector.shape_cast %19 : vector<1x8x16xbf16> to vector<8x16xbf16>
    %c0_15 = arith.constant 0 : index
    %c2_16 = arith.constant 2 : index
    %21 = vector.load %arg3[%c0_15, %c2_16] : memref<64x8xf32, #tpu.memory_space<vmem>>, vector<8x1xf32>
    %cst_17 = arith.constant dense<0.000000e+00> : vector<8x512xf32>
    %22 = tpu.matmul %20, %18, %cst_17 {dimension_numbers = #tpu.dot_dimension_numbers<[1], [0], [0], [1], [0, 0, 1, 1], [], []>} : vector<8x16xbf16>, vector<16x512xbf16>, vector<8x512xf32> -> vector<8x512xf32>
    %23 = vector.broadcast %21 : vector<8x1xf32> to vector<8x512xf32>
    %24 = arith.addf %22, %23 : vector<8x512xf32>
    %cst_18 = arith.constant 0.000000e+00 : f32
    %25 = vector.broadcast %cst_18 : f32 to vector<8x512xf32>
    %26 = arith.maximumf %24, %25 : vector<8x512xf32>
    %27 = arith.truncf %26 : vector<8x512xf32> to vector<8x512xbf16>
    %c3 = arith.constant 3 : index
    %c0_19 = arith.constant 0 : index
    %c0_20 = arith.constant 0 : index
    %28 = vector.load %arg2[%c3, %c0_19, %c0_20] : memref<8x64x64xbf16, #tpu.memory_space<vmem>>, vector<1x4x8xbf16>
    %29 = vector.shape_cast %28 : vector<1x4x8xbf16> to vector<4x8xbf16>
    %c0_21 = arith.constant 0 : index
    %c3_22 = arith.constant 3 : index
    %30 = vector.load %arg3[%c0_21, %c3_22] : memref<64x8xf32, #tpu.memory_space<vmem>>, vector<4x1xf32>
    %cst_23 = arith.constant dense<0.000000e+00> : vector<4x512xf32>
    %31 = tpu.matmul %29, %27, %cst_23 {dimension_numbers = #tpu.dot_dimension_numbers<[1], [0], [0], [1], [0, 0, 1, 1], [], []>} : vector<4x8xbf16>, vector<8x512xbf16>, vector<4x512xf32> -> vector<4x512xf32>
    %32 = vector.broadcast %30 : vector<4x1xf32> to vector<4x512xf32>
    %33 = arith.addf %31, %32 : vector<4x512xf32>
    %34 = arith.truncf %33 : vector<4x512xf32> to vector<4x512xbf16>
    %c4 = arith.constant 4 : index
    %c0_24 = arith.constant 0 : index
    %c0_25 = arith.constant 0 : index
    %35 = vector.load %arg2[%c4, %c0_24, %c0_25] : memref<8x64x64xbf16, #tpu.memory_space<vmem>>, vector<1x8x4xbf16>
    %36 = vector.shape_cast %35 : vector<1x8x4xbf16> to vector<8x4xbf16>
    %c0_26 = arith.constant 0 : index
    %c4_27 = arith.constant 4 : index
    %37 = vector.load %arg3[%c0_26, %c4_27] : memref<64x8xf32, #tpu.memory_space<vmem>>, vector<8x1xf32>
    %cst_28 = arith.constant dense<0.000000e+00> : vector<8x512xf32>
    %38 = tpu.matmul %36, %34, %cst_28 {dimension_numbers = #tpu.dot_dimension_numbers<[1], [0], [0], [1], [0, 0, 1, 1], [], []>} : vector<8x4xbf16>, vector<4x512xbf16>, vector<8x512xf32> -> vector<8x512xf32>
    %39 = vector.broadcast %37 : vector<8x1xf32> to vector<8x512xf32>
    %40 = arith.addf %38, %39 : vector<8x512xf32>
    %cst_29 = arith.constant 0.000000e+00 : f32
    %41 = vector.broadcast %cst_29 : f32 to vector<8x512xf32>
    %42 = arith.maximumf %40, %41 : vector<8x512xf32>
    %43 = arith.truncf %42 : vector<8x512xf32> to vector<8x512xbf16>
    %c5 = arith.constant 5 : index
    %c0_30 = arith.constant 0 : index
    %c0_31 = arith.constant 0 : index
    %44 = vector.load %arg2[%c5, %c0_30, %c0_31] : memref<8x64x64xbf16, #tpu.memory_space<vmem>>, vector<1x16x8xbf16>
    %45 = vector.shape_cast %44 : vector<1x16x8xbf16> to vector<16x8xbf16>
    %c0_32 = arith.constant 0 : index
    %c5_33 = arith.constant 5 : index
    %46 = vector.load %arg3[%c0_32, %c5_33] : memref<64x8xf32, #tpu.memory_space<vmem>>, vector<16x1xf32>
    %cst_34 = arith.constant dense<0.000000e+00> : vector<16x512xf32>
    %47 = tpu.matmul %45, %43, %cst_34 {dimension_numbers = #tpu.dot_dimension_numbers<[1], [0], [0], [1], [0, 0, 1, 1], [], []>} : vector<16x8xbf16>, vector<8x512xbf16>, vector<16x512xf32> -> vector<16x512xf32>
    %48 = vector.broadcast %46 : vector<16x1xf32> to vector<16x512xf32>
    %49 = arith.addf %47, %48 : vector<16x512xf32>
    %cst_35 = arith.constant 0.000000e+00 : f32
    %50 = vector.broadcast %cst_35 : f32 to vector<16x512xf32>
    %51 = arith.maximumf %49, %50 : vector<16x512xf32>
    %52 = arith.truncf %51 : vector<16x512xf32> to vector<16x512xbf16>
    %c6 = arith.constant 6 : index
    %c0_36 = arith.constant 0 : index
    %c0_37 = arith.constant 0 : index
    %53 = vector.load %arg2[%c6, %c0_36, %c0_37] : memref<8x64x64xbf16, #tpu.memory_space<vmem>>, vector<1x32x16xbf16>
    %54 = vector.shape_cast %53 : vector<1x32x16xbf16> to vector<32x16xbf16>
    %c0_38 = arith.constant 0 : index
    %c6_39 = arith.constant 6 : index
    %55 = vector.load %arg3[%c0_38, %c6_39] : memref<64x8xf32, #tpu.memory_space<vmem>>, vector<32x1xf32>
    %cst_40 = arith.constant dense<0.000000e+00> : vector<32x512xf32>
    %56 = tpu.matmul %54, %52, %cst_40 {dimension_numbers = #tpu.dot_dimension_numbers<[1], [0], [0], [1], [0, 0, 1, 1], [], []>} : vector<32x16xbf16>, vector<16x512xbf16>, vector<32x512xf32> -> vector<32x512xf32>
    %57 = vector.broadcast %55 : vector<32x1xf32> to vector<32x512xf32>
    %58 = arith.addf %56, %57 : vector<32x512xf32>
    %cst_41 = arith.constant 0.000000e+00 : f32
    %59 = vector.broadcast %cst_41 : f32 to vector<32x512xf32>
    %60 = arith.maximumf %58, %59 : vector<32x512xf32>
    %61 = arith.truncf %60 : vector<32x512xf32> to vector<32x512xbf16>
    %c7 = arith.constant 7 : index
    %c0_42 = arith.constant 0 : index
    %c0_43 = arith.constant 0 : index
    %62 = vector.load %arg2[%c7, %c0_42, %c0_43] : memref<8x64x64xbf16, #tpu.memory_space<vmem>>, vector<1x64x32xbf16>
    %63 = vector.shape_cast %62 : vector<1x64x32xbf16> to vector<64x32xbf16>
    %c0_44 = arith.constant 0 : index
    %c7_45 = arith.constant 7 : index
    %64 = vector.load %arg3[%c0_44, %c7_45] : memref<64x8xf32, #tpu.memory_space<vmem>>, vector<64x1xf32>
    %cst_46 = arith.constant dense<0.000000e+00> : vector<64x512xf32>
    %65 = tpu.matmul %63, %61, %cst_46 {dimension_numbers = #tpu.dot_dimension_numbers<[1], [0], [0], [1], [0, 0, 1, 1], [], []>} : vector<64x32xbf16>, vector<32x512xbf16>, vector<64x512xf32> -> vector<64x512xf32>
    %66 = vector.broadcast %64 : vector<64x1xf32> to vector<64x512xf32>
    %67 = arith.addf %65, %66 : vector<64x512xf32>
    %cst_47 = arith.constant 0.000000e+00 : f32
    %68 = vector.broadcast %cst_47 : f32 to vector<64x512xf32>
    %69 = arith.subf %68, %67 : vector<64x512xf32>
    %70 = math.exp %69 : vector<64x512xf32>
    %cst_48 = arith.constant 1.000000e+00 : f32
    %71 = vector.broadcast %cst_48 : f32 to vector<64x512xf32>
    %72 = arith.addf %71, %70 : vector<64x512xf32>
    %73 = tpu.reciprocal %72 {approx = true} : vector<64x512xf32> -> vector<64x512xf32>
    %c0_49 = arith.constant 0 : index
    %c0_50 = arith.constant 0 : index
    %74 = vector.load %arg4[%c0_49, %c0_50] : memref<64x512xf32, #tpu.memory_space<vmem>>, vector<64x512xf32>
    tpu.vector_store %arg4[%c0_49, %c0_50], %73 {strides = array<i32>} : memref<64x512xf32, #tpu.memory_space<vmem>>, vector<64x512xf32>,
    return
  }
  func.func @transform_0(%arg0: i32) -> (i32, i32) {
    %c0_i32 = arith.constant 0 : i32
    %c0_i32_0 = arith.constant 0 : i32
    return %c0_i32, %arg0 : i32, i32
  }
  func.func @transform_1(%arg0: i32) -> (i32, i32, i32) {
    %c0_i32 = arith.constant 0 : i32
    %c0_i32_0 = arith.constant 0 : i32
    %c0_i32_1 = arith.constant 0 : i32
    %c0_i32_2 = arith.constant 0 : i32
    return %c0_i32, %c0_i32_0, %c0_i32_1 : i32, i32, i32
  }
  func.func @transform_2(%arg0: i32) -> (i32, i32) {
    %c0_i32 = arith.constant 0 : i32
    %c0_i32_0 = arith.constant 0 : i32
    %c0_i32_1 = arith.constant 0 : i32
    return %c0_i32, %c0_i32_0 : i32, i32
  }
  func.func @transform_3(%arg0: i32) -> (i32, i32) {
    %c0_i32 = arith.constant 0 : i32
    %c0_i32_0 = arith.constant 0 : i32
    return %c0_i32, %arg0 : i32, i32
  }
}

</mosaic_0001>

<bundles_post_ra>
// kernel: autoencoder_forward.1
= control target key start
LH: loop header
LB: loop body
LE: loop exit
PB: predicated region body
PF: predicated region fallthrough
CT: control target
= control target key end

     0   :  { %v1721_v1 = vmov 0   ;;  %vm149_vm0 = vcmask 523264   ;;  %v1722_v23 = vmov 1   ;;  %vm306_vm1 = vcmask 261120   ;;  %s2081_s0 = inlined_call_operand.vmem [shape: bf16[64,512], index: 0, kind: input, shape index: {}]   ;;  %s2082_s1 = inlined_call_operand.vmem [shape: bf16[8,64,64], index: 1, kind: input, shape index: {}]   ;;  %s2083_s2 = inlined_call_operand.vmem [shape: f32[64,8], index: 2, kind: input, shape index: {}]   ;;  %s2084_s3 = inlined_call_operand.vmem [shape: f32[64,512], index: 3, kind: output, shape index: {}]  }
   0x1   :  { %v1559_v0 = vld [vmem:[%s2081_s0 + $0x4] ss:$16 sps:$4 sm:$0xff]   ;;  %188 = vmatprep.mubr.bf16.mxu0 %v1721_v1  ;;  %241 = vmatprep.mubr.bf16.mxu1 %v1721_v1  ;;  %v1561_v2 = vld [vmem:[%s2081_s0 + $0xc] ss:$16 sps:$4 sm:$0xff]   ;;  %v1563_v3 = vld [vmem:[%s2081_s0] ss:$16 sps:$4 sm:$0xff]  }
   0x2   :  { %1546 = vset.pattern.permute.xlu0 %v1721_v1  ;;  %1547 = vset.pattern.permute.xlu1 %v1721_v1  ;;  %v1564_v4 = vld [vmem:[%s2081_s0 + $0x8] ss:$16 sps:$4 sm:$0xff]   ;;  %v1565_v5 = vld [vmem:[%s2081_s0 + $0x24] ss:$16 sps:$4 sm:$0xff]   ;;  %v1567_v6 = vld [vmem:[%s2081_s0 + $0x2c] ss:$16 sps:$4 sm:$0xff]  }
   0x3   :  { %156 = vmatprep.subr.bf16.mxu0 %v1559_v0  ;;  %209 = vmatprep.subr.bf16.mxu1 %v1561_v2  ;;  %v1569_v7 = vld [vmem:[%s2081_s0 + $0x20] ss:$16 sps:$4 sm:$0xff]   ;;  %v1570_v8 = vld [vmem:[%s2081_s0 + $0x28] ss:$16 sps:$4 sm:$0xff]   ;;  %v1571_v9 = vld [vmem:[%s2081_s0 + $0x44] ss:$16 sps:$4 sm:$0xff]  }
   0x4   :  { %157 = vmatpush1.bf16.msra.mxu0 %v1563_v3  ;;  %210 = vmatpush1.bf16.msra.mxu1 %v1564_v4  ;;  %v1573_v10 = vld [vmem:[%s2081_s0 + $0x4c] ss:$16 sps:$4 sm:$0xff]   ;;  %v1575_v11 = vld [vmem:[%s2081_s0 + $0x40] ss:$16 sps:$4 sm:$0xff]   ;;  %v1576_v12 = vld [vmem:[%s2081_s0 + $0x48] ss:$16 sps:$4 sm:$0xff]  }
   0x5   :  { %158 = vmatprep.subr.bf16.mxu0 %v1565_v5  ;;  %211 = vmatprep.subr.bf16.mxu1 %v1567_v6  ;;  %v1577_v13 = vld [vmem:[%s2081_s0 + $0x64] ss:$16 sps:$4 sm:$0xff]   ;;  %v1579_v14 = vld [vmem:[%s2081_s0 + $0x6c] ss:$16 sps:$4 sm:$0xff]   ;;  %v1581_v15 = vld [vmem:[%s2081_s0 + $0x60] ss:$16 sps:$4 sm:$0xff]  }
   0x6   :  { %v1582_v16 = vld [vmem:[%s2081_s0 + $0x68] ss:$16 sps:$4 sm:$0xff]   ;;  %v1804_v17 = vld [vmem:[%s2083_s2] sm:$0xff]  ;;  %v1817_v20 = vld [vmem:[%s2083_s2 + $0x10] sm:$0xff]  ;;  %vm416_vm2 = vcmask 130048   ;;  %vm522_vm3 = vcmask 1043456  }
   0x7   :  { %v1583_v18 = vld [vmem:[%s2082_s1] sm:$0xff]   ;;  %v1812_v19 = vld [vmem:[%s2083_s2 + $0x8] sm:$0xff]  ;;  %v1822_v21 = vld [vmem:[%s2083_s2 + $0x18] sm:$0xff]  ;;  %41 = vperm.xlu0 %1546, %v1804_v17   ;;  %51 = vperm.xlu1 %1547, %v1817_v20   ;;  %vm518_vm4 = vcmask 64512   ;;  %vm631_vm5 = vcmask 1041408   ;;  %vm627_vm6 = vcmask 31744  }
   0x8   :  { %159 = vmatpush1.bf16.msra.mxu0 %v1569_v7  ;;  %212 = vmatpush1.bf16.msra.mxu1 %v1570_v8  ;;  %v1584_v22 = vld [vmem:[%s2082_s1 + $0x8] sm:$0xff]  }
   0x9   :  { %160 = vmatprep.subr.bf16.mxu0 %v1571_v9  ;;  %213 = vmatprep.subr.bf16.mxu1 %v1573_v10 }
   0xb   :  { %46 = vperm.xlu0 %1546, %v1812_v19   ;;  %56 = vperm.xlu1 %1547, %v1822_v21  }
   0xc   :  { %161 = vmatpush1.bf16.msra.mxu0 %v1575_v11  ;;  %214 = vmatpush1.bf16.msra.mxu1 %v1576_v12 }
   0xd   :  { %162 = vmatprep.subr.bf16.mxu0 %v1577_v13  ;;  %215 = vmatprep.subr.bf16.mxu1 %v1579_v14 }
   0xf   :  { %1548 = vset.pattern.permute.xlu0 %v1722_v23  ;;  %1549 = vset.pattern.permute.xlu1 %v1722_v23 }
  0x10   :  { %163 = vmatpush1.bf16.msra.mxu0 %v1581_v15  ;;  %216 = vmatpush1.bf16.msra.mxu1 %v1582_v16 }
  0x11   :  { %293 = vperm.xlu0 %1548, %v1804_v17   ;;  %298 = vperm.xlu1 %1549, %v1812_v19  }
  0x13   :  { %1479 = vmatmul.mubr.msk.bf16.vlgmr.msra.gmra.mrb[0].mxu0 %vm149_vm0, %v1583_v18  ;;  %1481 = vmatmul.mubr.msk.bf16.vlgmr.msra.gmra.mrb[0].mxu1 %vm149_vm0, %v1583_v18 }
  0x14   :  { %198 = vmatprep.mubr.bf16.mxu0 %v1721_v1  ;;  %251 = vmatprep.mubr.bf16.mxu1 %v1721_v1 }
  0x1b   :  { %1480 = vmatmul.mubr.msk.bf16.gmra.mrb[4].mxu0 %vm149_vm0, %v1584_v22  ;;  %1482 = vmatmul.mubr.msk.bf16.gmra.mrb[4].mxu1 %vm149_vm0, %v1584_v22 }
  0x1c   :  { %342 = vmatprep.mubr.bf16.mxu0 %v1721_v1  ;;  %385 = vmatprep.mubr.bf16.mxu1 %v1721_v1 }
  0x86   :  { %v42_v24 = vpop.permute.xlu0 %41  ;;  %v52_v26 = vpop.permute.xlu1 %51 }
  0x8a   :  { %v47_v25 = vpop.permute.xlu0 %46  ;;  %v57_v53 = vpop.permute.xlu1 %56 }
  0xe6   :  { %v190_v27 = vpop.f32.mrb[0].mxu0  ;;  %v243_v28 = vpop.f32.mrb[0].mxu1 }
  0xe7   :  { %v191_v29 = vadd.f32 %v190_v27, %v42_v24  ;;  %v244_v30 = vadd.f32 %v243_v28, %v42_v24  ;;  %v192_v31 = vpop.f32.mrb[1].mxu0  ;;  %v245_v32 = vpop.f32.mrb[1].mxu1 }
  0xe8   :  { %v193_v33 = vadd.f32 %v192_v31, %v42_v24  ;;  %v246_v34 = vadd.f32 %v245_v32, %v42_v24  ;;  %v194_v35 = vpop.f32.mrb[2].mxu0  ;;  %v247_v36 = vpop.f32.mrb[2].mxu1 }
  0xe9   :  { %v195_v37 = vadd.f32 %v194_v35, %v47_v25  ;;  %v248_v38 = vadd.f32 %v247_v36, %v47_v25  ;;  %v196_v39 = vpop.f32.mrb[3].mxu0  ;;  %v249_v40 = vpop.f32.mrb[3].mxu1  ;;  %v262_v43 = vmax.f32 %v191_v29, 0.0  ;;  %v264_v44 = vmax.f32 %v244_v30, 0.0 }
  0xea   :  { %v197_v41 = vadd.f32 %v196_v39, %v47_v25  ;;  %v250_v42 = vadd.f32 %v249_v40, %v47_v25  ;;  %v263_v47 = vmax.f32 %v193_v33, 0.0  ;;  %v265_v48 = vmax.f32 %v246_v34, 0.0  ;;  %v1585_v25 = vld [vmem:[%s2082_s1 + $0x20] sm:$0xff]   ;;  %v294_v27 = vpop.permute.xlu0 %293  ;;  %v299_v28 = vpop.permute.xlu1 %298 }
  0xeb   :  { %v266_v45 = vmax.f32 %v195_v37, 0.0  ;;  %v268_v46 = vmax.f32 %v248_v38, 0.0 }
  0xec   :  { %v267_v49 = vmax.f32 %v197_v41, 0.0  ;;  %v269_v50 = vmax.f32 %v250_v42, 0.0 }
  0xed   :  { %v278_v51 = vpack.c.bf16 %v266_v45, %v262_v43  ;;  %v280_v52 = vpack.c.bf16 %v268_v46, %v264_v44 }
  0xee   :  { %v279_v54 = vpack.c.bf16 %v267_v49, %v263_v47  ;;  %v281_v55 = vpack.c.bf16 %v269_v50, %v265_v48  ;;  %v200_v56 = vpop.f32.mrb[4].mxu0  ;;  %v253_v57 = vpop.f32.mrb[4].mxu1 }
  0xef   :  { %v201_v58 = vadd.f32 %v200_v56, %v52_v26  ;;  %v254_v59 = vadd.f32 %v253_v57, %v52_v26  ;;  %v202_v60 = vpop.f32.mrb[5].mxu0  ;;  %v255_v61 = vpop.f32.mrb[5].mxu1  ;;  %v1488_v57 = vld [vmem:[%s2082_s1 + $0x40] sm:$0xf] }
  0xf0   :  { %v203_v62 = vadd.f32 %v202_v60, %v52_v26  ;;  %v256_v63 = vadd.f32 %v255_v61, %v52_v26  ;;  %v204_v0 = vpop.f32.mrb[6].mxu0  ;;  %v257_v2 = vpop.f32.mrb[6].mxu1  ;;  %310 = vmatprep.subr.bf16.mxu0 %v279_v54  ;;  %353 = vmatprep.subr.bf16.mxu1 %v281_v55  ;;  %v1723_v26 = vmov 2  }
  0xf1   :  { %v205_v3 = vadd.f32 %v204_v0, %v57_v53  ;;  %v258_v4 = vadd.f32 %v257_v2, %v57_v53  ;;  %v206_v5 = vpop.f32.mrb[7].mxu0  ;;  %v259_v6 = vpop.f32.mrb[7].mxu1  ;;  %311 = vmatpush1.bf16.msra.mxu0 %v278_v51  ;;  %354 = vmatpush1.bf16.msra.mxu1 %v280_v52  ;;  %v270_v9 = vmax.f32 %v201_v58, 0.0  ;;  %v272_v10 = vmax.f32 %v254_v59, 0.0  ;;  %v512_v58 = vld [vmem:[%s2083_s2] sm:$0xf] }
  0xf2   :  { %v207_v7 = vadd.f32 %v206_v5, %v57_v53  ;;  %v260_v8 = vadd.f32 %v259_v6, %v57_v53  ;;  %v271_v13 = vmax.f32 %v203_v62, 0.0  ;;  %v273_v14 = vmax.f32 %v256_v63, 0.0  ;;  %1550 = vset.pattern.permute.xlu1 %v1723_v26 }
  0xf3   :  { %v274_v11 = vmax.f32 %v205_v3, 0.0  ;;  %v276_v12 = vmax.f32 %v258_v4, 0.0  ;;  %413 = vperm.xlu1 %1550, %v1804_v17   ;;  %v1724_v59 = vmov 3  }
  0xf4   :  { %v275_v15 = vmax.f32 %v207_v7, 0.0  ;;  %v277_v16 = vmax.f32 %v260_v8, 0.0  ;;  %1551 = vset.pattern.permute.xlu0 %v1724_v59 }
  0xf5   :  { %v282_v18 = vpack.c.bf16 %v274_v11, %v270_v9  ;;  %v284_v22 = vpack.c.bf16 %v276_v12, %v272_v10  ;;  %515 = vperm.xlu0 %1551, %v512_v58  }
  0xf6   :  { %v283_v23 = vpack.c.bf16 %v275_v15, %v271_v13  ;;  %v285_v24 = vpack.c.bf16 %v277_v16, %v273_v14 }
  0xf8   :  { %312 = vmatprep.subr.bf16.mxu0 %v283_v23  ;;  %355 = vmatprep.subr.bf16.mxu1 %v285_v24  ;;  %v1491_v24 = vld [vmem:[%s2082_s1 + $0x60] sm:$0x3] }
  0xf9   :  { %313 = vmatpush1.bf16.msra.mxu0 %v282_v18  ;;  %356 = vmatpush1.bf16.msra.mxu1 %v284_v22 }
  0xfc   :  { %1486 = vmatmul.mubr.msk.bf16.vlgmr.msra.gmra.mrb[8].mxu0 %vm306_vm1, %v1585_v25  ;;  %1487 = vmatmul.mubr.msk.bf16.vlgmr.msra.gmra.mrb[8].mxu1 %vm306_vm1, %v1585_v25  ;;  %v1725_v25 = vmov 4  }
  0xfd   :  { %452 = vmatprep.mubr.bf16.mxu0 %v1721_v1  ;;  %493 = vmatprep.mubr.bf16.mxu1 %v1721_v1 }
  0xfe   :  { %1552 = vset.pattern.permute.xlu1 %v1725_v25 }
  0xff   :  { %624 = vperm.xlu1 %1552, %v1804_v17  }
 0x172   :  { %v414_v60 = vpop.permute.xlu1 %413 }
 0x174   :  { %v516_v26 = vpop.permute.xlu0 %515 }
 0x1cf   :  { %v344_v29 = vpop.f32.mrb[8].mxu0  ;;  %v387_v30 = vpop.f32.mrb[8].mxu1 }
 0x1d0   :  { %v345_v31 = vadd.f32 %v344_v29, %v294_v27  ;;  %v388_v32 = vadd.f32 %v387_v30, %v294_v27  ;;  %v346_v33 = vpop.f32.mrb[9].mxu0  ;;  %v389_v34 = vpop.f32.mrb[9].mxu1 }
 0x1d1   :  { %v347_v35 = vadd.f32 %v346_v33, %v294_v27  ;;  %v390_v36 = vadd.f32 %v389_v34, %v294_v27  ;;  %v348_v37 = vpop.f32.mrb[10].mxu0  ;;  %v391_v38 = vpop.f32.mrb[10].mxu1 }
 0x1d2   :  { %v349_v39 = vadd.f32 %v348_v37, %v299_v28  ;;  %v392_v40 = vadd.f32 %v391_v38, %v299_v28  ;;  %v350_v41 = vpop.f32.mrb[11].mxu0  ;;  %v393_v42 = vpop.f32.mrb[11].mxu1  ;;  %v396_v45 = vmax.f32 %v345_v31, 0.0  ;;  %v398_v46 = vmax.f32 %v388_v32, 0.0 }
 0x1d3   :  { %v351_v43 = vadd.f32 %v350_v41, %v299_v28  ;;  %v394_v44 = vadd.f32 %v393_v42, %v299_v28  ;;  %v397_v49 = vmax.f32 %v347_v35, 0.0  ;;  %v399_v50 = vmax.f32 %v390_v36, 0.0 }
 0x1d4   :  { %v400_v47 = vmax.f32 %v349_v39, 0.0  ;;  %v402_v48 = vmax.f32 %v392_v40, 0.0 }
 0x1d5   :  { %v401_v51 = vmax.f32 %v351_v43, 0.0  ;;  %v403_v52 = vmax.f32 %v394_v44, 0.0 }
 0x1d6   :  { %v404_v53 = vpack.c.bf16 %v400_v47, %v396_v45  ;;  %v406_v54 = vpack.c.bf16 %v402_v48, %v398_v46  ;;  %v1496_v45 = vld [vmem:[%s2082_s1 + $0x80] sm:$0xf]  ;;  %v1726_v46 = vmov 5   ;;  %v625_v47 = vpop.permute.xlu1 %624 }
 0x1d7   :  { %v405_v55 = vpack.c.bf16 %v401_v51, %v397_v49  ;;  %v407_v56 = vpack.c.bf16 %v403_v52, %v399_v50  ;;  %1553 = vset.pattern.permute.xlu1 %v1726_v46  ;;  %1554 = vset.pattern.permute.xlu0 %v1726_v46  ;;  %v1043_v46 = vld [vmem:[%s2083_s2 + $0x20] sm:$0xff] }
 0x1d8   :  { %738 = vperm.xlu1 %1553, %v1804_v17   ;;  %742 = vperm.xlu0 %1554, %v1812_v19  }
 0x1d9   :  { %420 = vmatprep.subr.bf16.mxu0 %v405_v55  ;;  %461 = vmatprep.subr.bf16.mxu1 %v407_v56 }
 0x1da   :  { %421 = vmatpush1.bf16.msra.mxu0 %v404_v53  ;;  %462 = vmatpush1.bf16.msra.mxu1 %v406_v54 }
 0x1dd   :  { %1489 = vmatmul.mubr.msk.bf16.vlgmr.msra.gmra.mrb[12].mxu0 %vm416_vm2, %v1488_v57  ;;  %1490 = vmatmul.mubr.msk.bf16.vlgmr.msra.gmra.mrb[12].mxu1 %vm416_vm2, %v1488_v57 }
 0x1de   :  { %567 = vmatprep.mubr.bf16.mxu0 %v1721_v1  ;;  %608 = vmatprep.mubr.bf16.mxu1 %v1721_v1 }
 0x2b0   :  { %v454_v61 = vpop.f32.mrb[12].mxu0  ;;  %v495_v62 = vpop.f32.mrb[12].mxu1 }
 0x2b1   :  { %v455_v63 = vadd.f32 %v454_v61, %v414_v60  ;;  %v496_v0 = vadd.f32 %v495_v62, %v414_v60  ;;  %v456_v2 = vpop.f32.mrb[13].mxu0  ;;  %v497_v3 = vpop.f32.mrb[13].mxu1 }
 0x2b2   :  { %v457_v4 = vadd.f32 %v456_v2, %v414_v60  ;;  %v498_v5 = vadd.f32 %v497_v3, %v414_v60  ;;  %v458_v6 = vpop.f32.mrb[14].mxu0  ;;  %v499_v7 = vpop.f32.mrb[14].mxu1 }
 0x2b3   :  { %v502_v8 = vmax.f32 %v455_v63, 0.0  ;;  %v504_v9 = vmax.f32 %v496_v0, 0.0  ;;  %v459_v10 = vpop.f32.mrb[15].mxu0  ;;  %v500_v11 = vpop.f32.mrb[15].mxu1  ;;  %v1586_v7 = vld [vmem:[%s2082_s1 + $0xa0] sm:$0xff]  }
 0x2b4   :  { %v503_v12 = vmax.f32 %v457_v4, 0.0  ;;  %v505_v13 = vmax.f32 %v498_v5, 0.0  ;;  %v743_v10 = vpop.permute.xlu0 %742 }
 0x2b5   :  { %v506_v14 = vpack.c.bf16 %v502_v8, %v502_v8  ;;  %v508_v15 = vpack.c.bf16 %v504_v9, %v504_v9  ;;  %v1727_v8 = vmov 6   ;;  %v739_v9 = vpop.permute.xlu1 %738 }
 0x2b6   :  { %v507_v16 = vpack.c.bf16 %v503_v12, %v503_v12  ;;  %v509_v18 = vpack.c.bf16 %v505_v13, %v505_v13  ;;  %1555 = vset.pattern.permute.xlu1 %v1727_v8  ;;  %1556 = vset.pattern.permute.xlu0 %v1727_v8 }
 0x2b7   :  { %v524_v22 = vsel %vm522_vm3, %v506_v14, 0  ;;  %v530_v23 = vsel %vm522_vm3, %v508_v15, 0  ;;  %869 = vperm.xlu1 %1555, %v1804_v17   ;;  %877 = vperm.xlu0 %1556, %v1817_v20  }
 0x2b8   :  { %1492 = vmatprep.subr.msk.bf16.mxu0 %vm522_vm3, %v507_v16  ;;  %1494 = vmatprep.subr.msk.bf16.mxu1 %vm522_vm3, %v509_v18 }
 0x2b9   :  { %536 = vmatpush1.bf16.msra.mxu0 %v524_v22  ;;  %577 = vmatpush1.bf16.msra.mxu1 %v530_v23 }
 0x2bb   :  { %873 = vperm.xlu1 %1555, %v1812_v19  }
 0x2bc   :  { %1493 = vmatmul.mubr.msk.bf16.vlgmr.msra.gmra.mrb[16].mxu0 %vm518_vm4, %v1491_v24  ;;  %1495 = vmatmul.mubr.msk.bf16.vlgmr.msra.gmra.mrb[16].mxu1 %vm518_vm4, %v1491_v24 }
 0x2bd   :  { %676 = vmatprep.mubr.bf16.mxu0 %v1721_v1  ;;  %717 = vmatprep.mubr.bf16.mxu1 %v1721_v1 }
 0x2bf   :  { %881 = vperm.xlu1 %1555, %v1822_v21  }
 0x38f   :  { %v569_v27 = vpop.f32.mrb[16].mxu0  ;;  %v610_v28 = vpop.f32.mrb[16].mxu1 }
 0x390   :  { %v570_v29 = vadd.f32 %v569_v27, %v516_v26  ;;  %v611_v30 = vadd.f32 %v610_v28, %v516_v26  ;;  %v571_v31 = vpop.f32.mrb[17].mxu0  ;;  %v612_v32 = vpop.f32.mrb[17].mxu1 }
 0x391   :  { %v572_v33 = vadd.f32 %v571_v31, %v516_v26  ;;  %v613_v34 = vadd.f32 %v612_v32, %v516_v26  ;;  %v573_v35 = vpop.f32.mrb[18].mxu0  ;;  %v614_v36 = vpop.f32.mrb[18].mxu1 }
 0x392   :  { %v617_v37 = vpack.c.bf16 %v570_v29, %v570_v29  ;;  %v619_v38 = vpack.c.bf16 %v611_v30, %v611_v30  ;;  %v574_v39 = vpop.f32.mrb[19].mxu0  ;;  %v615_v40 = vpop.f32.mrb[19].mxu1 }
 0x393   :  { %v618_v41 = vpack.c.bf16 %v572_v33, %v572_v33  ;;  %v620_v42 = vpack.c.bf16 %v613_v34, %v613_v34 }
 0x394   :  { %v633_v43 = vsel %vm631_vm5, %v617_v37, 0  ;;  %v639_v44 = vsel %vm631_vm5, %v619_v38, 0 }
 0x395   :  { %1497 = vmatprep.subr.msk.bf16.mxu0 %vm631_vm5, %v618_v41  ;;  %1499 = vmatprep.subr.msk.bf16.mxu1 %vm631_vm5, %v620_v42 }
 0x396   :  { %645 = vmatpush1.bf16.msra.mxu0 %v633_v43  ;;  %686 = vmatpush1.bf16.msra.mxu1 %v639_v44  ;;  %v1587_v43 = vld [vmem:[%s2082_s1 + $0xc0] sm:$0xff]   ;;  %v1588_v44 = vld [vmem:[%s2082_s1 + $0xc8] sm:$0xff]  }
 0x399   :  { %1498 = vmatmul.mubr.msk.bf16.vlgmr.msra.gmra.mrb[20].mxu0 %vm627_vm6, %v1496_v45  ;;  %1500 = vmatmul.mubr.msk.bf16.vlgmr.msra.gmra.mrb[20].mxu1 %vm627_vm6, %v1496_v45  ;;  %v1728_v45 = vmov 7  }
 0x39a   :  { %797 = vmatprep.mubr.bf16.mxu0 %v1721_v1  ;;  %840 = vmatprep.mubr.bf16.mxu1 %v1721_v1 }
 0x39b   :  { %1557 = vset.pattern.permute.xlu1 %v1728_v45  ;;  %1558 = vset.pattern.permute.xlu0 %v1728_v45 }
 0x39c   :  { %1049 = vperm.xlu1 %1557, %v1804_v17   ;;  %1054 = vperm.xlu0 %1558, %v1812_v19   ;;  %v1044_v17 = vld [vmem:[%s2083_s2 + $0x28] sm:$0xff]  ;;  %v1046_v19 = vld [vmem:[%s2083_s2 + $0x38] sm:$0xff] }
 0x3a0   :  { %1059 = vperm.xlu1 %1557, %v1817_v20   ;;  %1069 = vperm.xlu0 %1558, %v1043_v46  }
 0x3a4   :  { %1064 = vperm.xlu1 %1557, %v1822_v21  }
 0x3a8   :  { %1074 = vperm.xlu1 %1557, %v1044_v17   ;;  %v1590_v17 = vld [vmem:[%s2082_s1 + $0xe8] sm:$0xff]  }
 0x3ac   :  { %1084 = vperm.xlu1 %1557, %v1046_v19   ;;  %v1591_v19 = vld [vmem:[%s2082_s1 + $0xf0] sm:$0xff]  }
 0x46c   :  { %v678_v48 = vpop.f32.mrb[20].mxu0  ;;  %v719_v49 = vpop.f32.mrb[20].mxu1 }
 0x46d   :  { %v679_v50 = vadd.f32 %v678_v48, %v625_v47  ;;  %v720_v51 = vadd.f32 %v719_v49, %v625_v47  ;;  %v680_v52 = vpop.f32.mrb[21].mxu0  ;;  %v721_v53 = vpop.f32.mrb[21].mxu1 }
 0x46e   :  { %v681_v54 = vadd.f32 %v680_v52, %v625_v47  ;;  %v722_v55 = vadd.f32 %v721_v53, %v625_v47  ;;  %v682_v56 = vpop.f32.mrb[22].mxu0  ;;  %v723_v57 = vpop.f32.mrb[22].mxu1  ;;  %v1045_v47 = vld [vmem:[%s2083_s2 + $0x30] sm:$0xff] }
 0x46f   :  { %v726_v58 = vmax.f32 %v679_v50, 0.0  ;;  %v728_v59 = vmax.f32 %v720_v51, 0.0  ;;  %v683_v60 = vpop.f32.mrb[23].mxu0  ;;  %v724_v61 = vpop.f32.mrb[23].mxu1  ;;  %1079 = vperm.xlu0 %1558, %v1045_v47   ;;  %v1589_v47 = vld [vmem:[%s2082_s1 + $0xe0] sm:$0xff]  }
 0x470   :  { %v727_v62 = vmax.f32 %v681_v54, 0.0  ;;  %v729_v63 = vmax.f32 %v722_v55, 0.0  ;;  %v870_v48 = vpop.permute.xlu1 %869 }
 0x471   :  { %v730_v0 = vpack.c.bf16 %v726_v58, %v726_v58  ;;  %v732_v2 = vpack.c.bf16 %v728_v59, %v728_v59 }
 0x472   :  { %v731_v3 = vpack.c.bf16 %v727_v62, %v727_v62  ;;  %v733_v4 = vpack.c.bf16 %v729_v63, %v729_v63 }
 0x473   :  { %v754_v5 = vsel %vm522_vm3, %v730_v0, 0  ;;  %v760_v6 = vsel %vm522_vm3, %v732_v2, 0 }
 0x474   :  { %1504 = vmatprep.subr.msk.bf16.mxu0 %vm522_vm3, %v731_v3  ;;  %1506 = vmatprep.subr.msk.bf16.mxu1 %vm522_vm3, %v733_v4  ;;  %v874_v20 = vpop.permute.xlu1 %873 }
 0x475   :  { %766 = vmatpush1.bf16.msra.mxu0 %v754_v5  ;;  %809 = vmatpush1.bf16.msra.mxu1 %v760_v6 }
 0x478   :  { %1505 = vmatmul.mubr.msk.bf16.vlgmr.msra.gmra.mrb[24].mxu0 %vm518_vm4, %v1586_v7  ;;  %1507 = vmatmul.mubr.msk.bf16.vlgmr.msra.gmra.mrb[24].mxu1 %vm518_vm4, %v1586_v7 }
 0x479   :  { %932 = vmatprep.mubr.bf16.mxu0 %v1721_v1  ;;  %985 = vmatprep.mubr.bf16.mxu1 %v1721_v1 }
 0x54b   :  { %v799_v11 = vpop.f32.mrb[24].mxu0  ;;  %v842_v12 = vpop.f32.mrb[24].mxu1 }
 0x54c   :  { %v800_v13 = vadd.f32 %v799_v11, %v739_v9  ;;  %v843_v14 = vadd.f32 %v842_v12, %v739_v9  ;;  %v801_v15 = vpop.f32.mrb[25].mxu0  ;;  %v844_v16 = vpop.f32.mrb[25].mxu1 }
 0x54d   :  { %v802_v18 = vadd.f32 %v801_v15, %v739_v9  ;;  %v845_v22 = vadd.f32 %v844_v16, %v739_v9  ;;  %v803_v23 = vpop.f32.mrb[26].mxu0  ;;  %v846_v24 = vpop.f32.mrb[26].mxu1 }
 0x54e   :  { %v804_v25 = vadd.f32 %v803_v23, %v743_v10  ;;  %v847_v26 = vadd.f32 %v846_v24, %v743_v10  ;;  %v805_v27 = vpop.f32.mrb[27].mxu0  ;;  %v848_v28 = vpop.f32.mrb[27].mxu1  ;;  %v851_v31 = vmax.f32 %v800_v13, 0.0  ;;  %v853_v32 = vmax.f32 %v843_v14, 0.0 }
 0x54f   :  { %v806_v29 = vadd.f32 %v805_v27, %v743_v10  ;;  %v849_v30 = vadd.f32 %v848_v28, %v743_v10  ;;  %v852_v35 = vmax.f32 %v802_v18, 0.0  ;;  %v854_v36 = vmax.f32 %v845_v22, 0.0  ;;  %v878_v9 = vpop.permute.xlu0 %877  ;;  %v882_v10 = vpop.permute.xlu1 %881 }
 0x550   :  { %v855_v33 = vmax.f32 %v804_v25, 0.0  ;;  %v857_v34 = vmax.f32 %v847_v26, 0.0 }
 0x551   :  { %v856_v37 = vmax.f32 %v806_v29, 0.0  ;;  %v858_v38 = vmax.f32 %v849_v30, 0.0 }
 0x552   :  { %v859_v39 = vpack.c.bf16 %v855_v33, %v851_v31  ;;  %v861_v40 = vpack.c.bf16 %v857_v34, %v853_v32 }
 0x553   :  { %v860_v41 = vpack.c.bf16 %v856_v37, %v852_v35  ;;  %v862_v42 = vpack.c.bf16 %v858_v38, %v854_v36 }
 0x555   :  { %900 = vmatprep.subr.bf16.mxu0 %v860_v41  ;;  %953 = vmatprep.subr.bf16.mxu1 %v862_v42 }
 0x556   :  { %901 = vmatpush1.bf16.msra.mxu0 %v859_v39  ;;  %954 = vmatpush1.bf16.msra.mxu1 %v861_v40 }
 0x559   :  { %1514 = vmatmul.mubr.msk.bf16.vlgmr.msra.gmra.mrb[28].mxu0 %vm416_vm2, %v1587_v43  ;;  %1516 = vmatmul.mubr.msk.bf16.vlgmr.msra.gmra.mrb[28].mxu1 %vm416_vm2, %v1587_v43 }
 0x55a   :  { %942 = vmatprep.mubr.bf16.mxu0 %v1721_v1  ;;  %995 = vmatprep.mubr.bf16.mxu1 %v1721_v1 }
 0x561   :  { %1515 = vmatmul.mubr.msk.bf16.gmra.mrb[32].mxu0 %vm416_vm2, %v1588_v44  ;;  %1517 = vmatmul.mubr.msk.bf16.gmra.mrb[32].mxu1 %vm416_vm2, %v1588_v44 }
 0x562   :  { %1151 = vmatprep.mubr.bf16.mxu0 %v1721_v1  ;;  %1224 = vmatprep.mubr.bf16.mxu1 %v1721_v1 }
 0x62c   :  { %v934_v49 = vpop.f32.mrb[28].mxu0  ;;  %v987_v50 = vpop.f32.mrb[28].mxu1 }
 0x62d   :  { %v935_v51 = vadd.f32 %v934_v49, %v870_v48  ;;  %v988_v52 = vadd.f32 %v987_v50, %v870_v48  ;;  %v936_v53 = vpop.f32.mrb[29].mxu0  ;;  %v989_v54 = vpop.f32.mrb[29].mxu1 }
 0x62e   :  { %v937_v21 = vadd.f32 %v936_v53, %v870_v48  ;;  %v990_v55 = vadd.f32 %v989_v54, %v870_v48  ;;  %v938_v56 = vpop.f32.mrb[30].mxu0  ;;  %v991_v57 = vpop.f32.mrb[30].mxu1  ;;  %v1592_v48 = vld [vmem:[%s2082_s1 + $0xf8] sm:$0xff]  }
 0x62f   :  { %v939_v58 = vadd.f32 %v938_v56, %v874_v20  ;;  %v992_v59 = vadd.f32 %v991_v57, %v874_v20  ;;  %v940_v60 = vpop.f32.mrb[31].mxu0  ;;  %v993_v61 = vpop.f32.mrb[31].mxu1  ;;  %v1006_v0 = vmax.f32 %v935_v51, 0.0  ;;  %v1008_v2 = vmax.f32 %v988_v52, 0.0 }
 0x630   :  { %v941_v62 = vadd.f32 %v940_v60, %v874_v20  ;;  %v994_v63 = vadd.f32 %v993_v61, %v874_v20  ;;  %v1007_v5 = vmax.f32 %v937_v21, 0.0  ;;  %v1009_v6 = vmax.f32 %v990_v55, 0.0  ;;  %v1050_v20 = vpop.permute.xlu1 %1049  ;;  %v1055_v50 = vpop.permute.xlu0 %1054 }
 0x631   :  { %v1010_v3 = vmax.f32 %v939_v58, 0.0  ;;  %v1012_v4 = vmax.f32 %v992_v59, 0.0 }
 0x632   :  { %v1011_v7 = vmax.f32 %v941_v62, 0.0  ;;  %v1013_v8 = vmax.f32 %v994_v63, 0.0 }
 0x633   :  { %v1022_v11 = vpack.c.bf16 %v1010_v3, %v1006_v0  ;;  %v1024_v12 = vpack.c.bf16 %v1012_v4, %v1008_v2 }
 0x634   :  { %v1023_v13 = vpack.c.bf16 %v1011_v7, %v1007_v5  ;;  %v1025_v14 = vpack.c.bf16 %v1013_v8, %v1009_v6  ;;  %v944_v15 = vpop.f32.mrb[32].mxu0  ;;  %v997_v16 = vpop.f32.mrb[32].mxu1 }
 0x635   :  { %v945_v18 = vadd.f32 %v944_v15, %v878_v9  ;;  %v998_v22 = vadd.f32 %v997_v16, %v878_v9  ;;  %v946_v23 = vpop.f32.mrb[33].mxu0  ;;  %v999_v24 = vpop.f32.mrb[33].mxu1 }
 0x636   :  { %v947_v25 = vadd.f32 %v946_v23, %v878_v9  ;;  %v1000_v26 = vadd.f32 %v999_v24, %v878_v9  ;;  %v948_v27 = vpop.f32.mrb[34].mxu0  ;;  %v1001_v28 = vpop.f32.mrb[34].mxu1  ;;  %1119 = vmatprep.subr.bf16.mxu0 %v1023_v13  ;;  %1192 = vmatprep.subr.bf16.mxu1 %v1025_v14 }
 0x637   :  { %v949_v29 = vadd.f32 %v948_v27, %v882_v10  ;;  %v1002_v30 = vadd.f32 %v1001_v28, %v882_v10  ;;  %v950_v31 = vpop.f32.mrb[35].mxu0  ;;  %v1003_v32 = vpop.f32.mrb[35].mxu1  ;;  %1120 = vmatpush1.bf16.msra.mxu0 %v1022_v11  ;;  %1193 = vmatpush1.bf16.msra.mxu1 %v1024_v12  ;;  %v1014_v35 = vmax.f32 %v945_v18, 0.0  ;;  %v1016_v36 = vmax.f32 %v998_v22, 0.0 }
 0x638   :  { %v951_v33 = vadd.f32 %v950_v31, %v882_v10  ;;  %v1004_v34 = vadd.f32 %v1003_v32, %v882_v10  ;;  %v1015_v39 = vmax.f32 %v947_v25, 0.0  ;;  %v1017_v40 = vmax.f32 %v1000_v26, 0.0  ;;  %v1060_v49 = vpop.permute.xlu1 %1059 }
 0x639   :  { %v1018_v37 = vmax.f32 %v949_v29, 0.0  ;;  %v1020_v38 = vmax.f32 %v1002_v30, 0.0 }
 0x63a   :  { %v1019_v41 = vmax.f32 %v951_v33, 0.0  ;;  %v1021_v42 = vmax.f32 %v1004_v34, 0.0 }
 0x63b   :  { %v1026_v43 = vpack.c.bf16 %v1018_v37, %v1014_v35  ;;  %v1028_v44 = vpack.c.bf16 %v1020_v38, %v1016_v36 }
 0x63c   :  { %v1027_v45 = vpack.c.bf16 %v1019_v41, %v1015_v39  ;;  %v1029_v46 = vpack.c.bf16 %v1021_v42, %v1017_v40  ;;  %v1949_v15 = vpop.permute.xlu1 %1064 }
 0x63e   :  { %1121 = vmatprep.subr.bf16.mxu0 %v1027_v45  ;;  %1194 = vmatprep.subr.bf16.mxu1 %v1029_v46 }
 0x63f   :  { %1122 = vmatpush1.bf16.msra.mxu0 %v1026_v43  ;;  %1195 = vmatpush1.bf16.msra.mxu1 %v1028_v44 }
 0x642   :  { %1530 = vmatmul.mubr.msk.bf16.vlgmr.msra.gmra.mrb[36].mxu0 %vm306_vm1, %v1589_v47  ;;  %1534 = vmatmul.mubr.msk.bf16.vlgmr.msra.gmra.mrb[36].mxu1 %vm306_vm1, %v1589_v47 }
 0x643   :  { %1161 = vmatprep.mubr.bf16.mxu0 %v1721_v1  ;;  %1234 = vmatprep.mubr.bf16.mxu1 %v1721_v1 }
 0x64a   :  { %1531 = vmatmul.mubr.msk.bf16.gmra.mrb[40].mxu0 %vm306_vm1, %v1590_v17  ;;  %1535 = vmatmul.mubr.msk.bf16.gmra.mrb[40].mxu1 %vm306_vm1, %v1590_v17 }
 0x64b   :  { %1171 = vmatprep.mubr.bf16.mxu0 %v1721_v1  ;;  %1244 = vmatprep.mubr.bf16.mxu1 %v1721_v1 }
 0x652   :  { %1532 = vmatmul.mubr.msk.bf16.gmra.mrb[44].mxu0 %vm306_vm1, %v1591_v19  ;;  %1536 = vmatmul.mubr.msk.bf16.gmra.mrb[44].mxu1 %vm306_vm1, %v1591_v19 }
 0x653   :  { %1181 = vmatprep.mubr.bf16.mxu0 %v1721_v1  ;;  %1254 = vmatprep.mubr.bf16.mxu1 %v1721_v1 }
 0x65a   :  { %1533 = vmatmul.mubr.msk.bf16.gmra.mrb[48].mxu0 %vm306_vm1, %v1592_v48  ;;  %1537 = vmatmul.mubr.msk.bf16.gmra.mrb[48].mxu1 %vm306_vm1, %v1592_v48 }
 0x715   :  { %v1153_v51 = vpop.f32.mrb[36].mxu0  ;;  %v1226_v52 = vpop.f32.mrb[36].mxu1 }
 0x716   :  { %v1154_v53 = vadd.f32 %v1153_v51, %v1050_v20  ;;  %v1227_v54 = vadd.f32 %v1226_v52, %v1050_v20  ;;  %v1155_v21 = vpop.f32.mrb[37].mxu0  ;;  %v1228_v55 = vpop.f32.mrb[37].mxu1 }
 0x717   :  { %v1156_v56 = vadd.f32 %v1155_v21, %v1050_v20  ;;  %v1229_v57 = vadd.f32 %v1228_v55, %v1050_v20  ;;  %v1157_v1 = vpop.f32.mrb[38].mxu0  ;;  %v1230_v58 = vpop.f32.mrb[38].mxu1 }
 0x718   :  { %v1265_v59 = vsub.f32 0.0, %v1154_v53  ;;  %v1267_v60 = vsub.f32 0.0, %v1227_v54  ;;  %v1158_v61 = vadd.f32 %v1157_v1, %v1055_v50  ;;  %v1231_v62 = vadd.f32 %v1230_v58, %v1055_v50  ;;  %v1159_v63 = vpop.f32.mrb[39].mxu0  ;;  %v1232_v0 = vpop.f32.mrb[39].mxu1 }
 0x719   :  { %v1266_v2 = vsub.f32 0.0, %v1156_v56  ;;  %v1268_v3 = vsub.f32 0.0, %v1229_v57  ;;  %v1160_v4 = vadd.f32 %v1159_v63, %v1055_v50  ;;  %v1233_v5 = vadd.f32 %v1232_v0, %v1055_v50 }
 0x71a   :  { %v1297_v6 = vmul.f32 1.442695, %v1265_v59  ;;  %v1301_v7 = vmul.f32 1.442695, %v1267_v60  ;;  %v1269_v8 = vsub.f32 0.0, %v1158_v61  ;;  %v1271_v9 = vsub.f32 0.0, %v1231_v62 }
 0x71b   :  { %v1299_v10 = vmul.f32 1.442695, %v1266_v2  ;;  %v1303_v11 = vmul.f32 1.442695, %v1268_v3  ;;  %v1270_v12 = vsub.f32 0.0, %v1160_v4  ;;  %v1272_v13 = vsub.f32 0.0, %v1233_v5  ;;  %v1075_v3 = vpop.permute.xlu1 %1074 }
 0x71c   :  { %1593 = vpow2.f32 %v1297_v6  ;;  %v1305_v14 = vmul.f32 1.442695, %v1269_v8  ;;  %v1309_v16 = vmul.f32 1.442695, %v1271_v9  ;;  %v1070_v8 = vpop.permute.xlu0 %1069 }
 0x71d   :  { %1595 = vpow2.f32 %v1301_v7  ;;  %v1163_v18 = vpop.f32.mrb[40].mxu0  ;;  %v1236_v22 = vpop.f32.mrb[40].mxu1  ;;  %v1307_v23 = vmul.f32 1.442695, %v1270_v12  ;;  %v1311_v28 = vmul.f32 1.442695, %v1272_v13 }
 0x71e   :  { %1597 = vpow2.f32 %v1299_v10  ;;  %v1164_v24 = vadd.f32 %v1163_v18, %v1060_v49  ;;  %v1237_v25 = vadd.f32 %v1236_v22, %v1060_v49  ;;  %v1165_v26 = vpop.f32.mrb[41].mxu0  ;;  %v1238_v27 = vpop.f32.mrb[41].mxu1 }
 0x71f   :  { %1599 = vpow2.f32 %v1303_v11  ;;  %v1166_v29 = vadd.f32 %v1165_v26, %v1060_v49  ;;  %v1239_v30 = vadd.f32 %v1238_v27, %v1060_v49  ;;  %v1167_v31 = vpop.f32.mrb[42].mxu0  ;;  %v1240_v32 = vpop.f32.mrb[42].mxu1 }
 0x720   :  { %1601 = vpow2.f32 %v1305_v14  ;;  %v1273_v33 = vsub.f32 0.0, %v1164_v24  ;;  %v1275_v34 = vsub.f32 0.0, %v1237_v25  ;;  %v1168_v35 = vadd.f32 %v1167_v31, %v1949_v15  ;;  %v1169_v36 = vpop.f32.mrb[43].mxu0  ;;  %v1242_v37 = vpop.f32.mrb[43].mxu1 }
 0x721   :  { %1603 = vpow2.f32 %v1309_v16  ;;  %v1274_v38 = vsub.f32 0.0, %v1166_v29  ;;  %v1276_v39 = vsub.f32 0.0, %v1239_v30  ;;  %v1241_v46 = vadd.f32 %v1240_v32, %v1949_v15 }
 0x722   :  { %1605 = vpow2.f32 %v1307_v23  ;;  %v1313_v40 = vmul.f32 1.442695, %v1273_v33  ;;  %v1317_v41 = vmul.f32 1.442695, %v1275_v34  ;;  %v1277_v42 = vsub.f32 0.0, %v1168_v35 }
 0x723   :  { %1607 = vpow2.f32 %v1311_v28  ;;  %v1315_v43 = vmul.f32 1.442695, %v1274_v38  ;;  %v1319_v44 = vmul.f32 1.442695, %v1276_v39  ;;  %v1279_v57 = vsub.f32 0.0, %v1241_v46 }
 0x724   :  { %1609 = vpow2.f32 %v1313_v40  ;;  %v1321_v45 = vmul.f32 1.442695, %v1277_v42  ;;  %v1170_v60 = vadd.f32 %v1169_v36, %v1949_v15  ;;  %v1243_v63 = vadd.f32 %v1242_v37, %v1949_v15 }
 0x725   :  { %1611 = vpow2.f32 %v1317_v41  ;;  %v1173_v47 = vpop.f32.mrb[44].mxu0  ;;  %v1953_v17 = vpop.f32.mrb[44].mxu1  ;;  %v1325_v6 = vmul.f32 1.442695, %v1279_v57 }
 0x726   :  { %v1594_v19 = vpop.eup %1593  ;;  %1613 = vpow2.f32 %v1315_v43  ;;  %v1175_v48 = vpop.f32.mrb[45].mxu0  ;;  %v1278_v12 = vsub.f32 0.0, %v1170_v60  ;;  %v1280_v18 = vsub.f32 0.0, %v1243_v63  ;;  %v1174_v28 = vadd.f32 %v1173_v47, %v1070_v8 }
 0x727   :  { %v1955_v20 = vpop.f32.mrb[45].mxu1  ;;  %v1596_v49 = vpop.eup %1595  ;;  %v1361_v50 = vadd.f32 1.0, %v1594_v19  ;;  %1615 = vpow2.f32 %v1319_v44  ;;  %v1176_v34 = vadd.f32 %v1175_v48, %v1070_v8  ;;  %v1247_v40 = vadd.f32 %v1953_v17, %v1070_v8 }
 0x728   :  { %v1177_v51 = vpop.f32.mrb[46].mxu0  ;;  %v1250_v52 = vpop.f32.mrb[46].mxu1  ;;  %v1363_v54 = vadd.f32 1.0, %v1596_v49  ;;  %1617 = vpow2.f32 %v1321_v45  ;;  %v1323_v43 = vmul.f32 1.442695, %v1278_v12  ;;  %v1249_v19 = vadd.f32 %v1955_v20, %v1070_v8 }
 0x729   :  { %v1598_v53 = vpop.eup %1597  ;;  %v1179_v21 = vpop.f32.mrb[47].mxu0  ;;  %1619 = vrcp.f32 %v1361_v50  ;;  %v1178_v7 = vadd.f32 %v1177_v51, %v1075_v3  ;;  %v1251_v13 = vadd.f32 %v1250_v52, %v1075_v3  ;;  %v1327_v46 = vmul.f32 1.442695, %v1280_v18 }
 0x72a   :  { %v1600_v55 = vpop.eup %1599  ;;  %v1362_v56 = vadd.f32 1.0, %v1598_v53  ;;  %v1252_v1 = vpop.f32.mrb[47].mxu1  ;;  %1621 = vrcp.f32 %v1363_v54  ;;  %v1180_v22 = vadd.f32 %v1179_v21, %v1075_v3  ;;  %v1281_v50 = vsub.f32 0.0, %v1174_v28 }
 0x72b   :  { %v1602_v58 = vpop.eup %1601  ;;  %v1364_v59 = vadd.f32 1.0, %v1600_v55  ;;  %v1253_v27 = vadd.f32 %v1252_v1, %v1075_v3  ;;  %v1285_v33 = vsub.f32 0.0, %v1178_v7  ;;  %v1287_v39 = vsub.f32 0.0, %v1251_v13  ;;  %v1976_v48 = vpop.permute.xlu0 %1079 }
 0x72c   :  { %v1604_v61 = vpop.eup %1603  ;;  %1623 = vrcp.f32 %v1362_v56  ;;  %v1365_v62 = vadd.f32 1.0, %v1602_v58  ;;  %v1286_v44 = vsub.f32 0.0, %v1180_v22  ;;  %v1282_v20 = vsub.f32 0.0, %v1176_v34  ;;  %v1085_v28 = vpop.permute.xlu1 %1084 }
 0x72d   :  { %v1606_v0 = vpop.eup %1605  ;;  %1625 = vrcp.f32 %v1364_v59  ;;  %v1367_v2 = vadd.f32 1.0, %v1604_v61  ;;  %v1183_v9 = vpop.f32.mrb[48].mxu0  ;;  %v1288_v47 = vsub.f32 0.0, %v1253_v27  ;;  %v1337_v17 = vmul.f32 1.442695, %v1285_v33 }
 0x72e   :  { %v1608_v4 = vpop.eup %1607  ;;  %1627 = vrcp.f32 %v1365_v62  ;;  %v1366_v5 = vadd.f32 1.0, %v1606_v0  ;;  %v1256_v14 = vpop.f32.mrb[48].mxu1  ;;  %v1184_v51 = vadd.f32 %v1183_v9, %v1976_v48  ;;  %v1341_v53 = vmul.f32 1.442695, %v1287_v39 }
 0x72f   :  { %v1610_v10 = vpop.eup %1609  ;;  %1629 = vrcp.f32 %v1367_v2  ;;  %v1368_v11 = vadd.f32 1.0, %v1608_v4  ;;  %v1959_v23 = vpop.f32.mrb[49].mxu0  ;;  %v1257_v54 = vadd.f32 %v1256_v14, %v1976_v48  ;;  %v1339_v55 = vmul.f32 1.442695, %v1286_v44 }
 0x730   :  { %v1612_v16 = vpop.eup %1611  ;;  %1631 = vrcp.f32 %v1366_v5  ;;  %v1369_v15 = vadd.f32 1.0, %v1610_v10  ;;  %v1961_v24 = vpop.f32.mrb[49].mxu1  ;;  %v1283_v56 = vsub.f32 0.0, %v1247_v40  ;;  %v1343_v1 = vmul.f32 1.442695, %v1288_v47 }
 0x731   :  { %v1614_v25 = vpop.eup %1613  ;;  %1633 = vrcp.f32 %v1368_v11  ;;  %v1371_v26 = vadd.f32 1.0, %v1612_v16  ;;  %v1963_v29 = vpop.f32.mrb[50].mxu0  ;;  %v1284_v58 = vsub.f32 0.0, %v1249_v19  ;;  %v1329_v60 = vmul.f32 1.442695, %v1281_v50 }
 0x732   :  { %v1965_v30 = vpop.f32.mrb[50].mxu1  ;;  %v1616_v31 = vpop.eup %1615  ;;  %1635 = vrcp.f32 %v1369_v15  ;;  %v1370_v32 = vadd.f32 1.0, %v1614_v25  ;;  %v1289_v61 = vsub.f32 0.0, %v1184_v51  ;;  %v1331_v63 = vmul.f32 1.442695, %v1282_v20 }
 0x733   :  { %v1967_v35 = vpop.f32.mrb[51].mxu0  ;;  %v1969_v36 = vpop.f32.mrb[51].mxu1  ;;  %1637 = vrcp.f32 %v1371_v26  ;;  %v1372_v38 = vadd.f32 1.0, %v1616_v31  ;;  %v1291_v0 = vsub.f32 0.0, %v1257_v54  ;;  %v1333_v3 = vmul.f32 1.442695, %v1283_v56 }
 0x734   :  { %v1618_v37 = vpop.eup %1617  ;;  %1639 = vrcp.f32 %v1370_v32  ;;  %v1335_v5 = vmul.f32 1.442695, %v1284_v58  ;;  %v1345_v7 = vmul.f32 1.442695, %v1289_v61  ;;  %v1186_v26 = vadd.f32 %v1959_v23, %v1976_v48 }
 0x735   :  { %v1620_v41 = vpop.eup %1619  ;;  %v1373_v42 = vadd.f32 1.0, %v1618_v37  ;;  %1641 = vrcp.f32 %v1372_v38  ;;  %v1349_v9 = vmul.f32 1.442695, %v1291_v0  ;;  %v1259_v32 = vadd.f32 %v1961_v24, %v1976_v48 }
 0x736   :  { %v1622_v45 = vpop.eup %1621  ;;  %1425 = vst [vmem:[%s2084_s3] sm:$0xff] %v1620_v41  ;;  %v1188_v37 = vadd.f32 %v1963_v29, %v1085_v28  ;;  %v1261_v40 = vadd.f32 %v1965_v30, %v1085_v28 }
 0x737   :  { %v1624_v49 = vpop.eup %1623  ;;  %1427 = vst [vmem:[%s2084_s3 + $0x10] sm:$0xff] %v1622_v45  ;;  %1643 = vrcp.f32 %v1373_v42  ;;  %v1290_v42 = vsub.f32 0.0, %v1186_v26  ;;  %v1292_v24 = vsub.f32 0.0, %v1259_v32 }
 0x738   :  { %v1626_v52 = vpop.eup %1625  ;;  %1426 = vst [vmem:[%s2084_s3 + $0x8] sm:$0xff] %v1624_v49  ;;  %1645 = vpow2.f32 %v1325_v6  ;;  %v1293_v29 = vsub.f32 0.0, %v1188_v37  ;;  %v1295_v30 = vsub.f32 0.0, %v1261_v40 }
 0x739   :  { %v1628_v21 = vpop.eup %1627  ;;  %1428 = vst [vmem:[%s2084_s3 + $0x18] sm:$0xff] %v1626_v52  ;;  %1647 = vpow2.f32 %v1323_v43  ;;  %v1190_v43 = vadd.f32 %v1967_v35, %v1085_v28  ;;  %v1347_v51 = vmul.f32 1.442695, %v1290_v42  ;;  %v1351_v20 = vmul.f32 1.442695, %v1292_v24 }
 0x73a   :  { %v1630_v57 = vpop.eup %1629  ;;  %1429 = vst [vmem:[%s2084_s3 + $0x20] sm:$0xff] %v1628_v21  ;;  %1649 = vpow2.f32 %v1327_v46  ;;  %v1263_v46 = vadd.f32 %v1969_v36, %v1085_v28  ;;  %v1353_v36 = vmul.f32 1.442695, %v1293_v29  ;;  %v1357_v56 = vmul.f32 1.442695, %v1295_v30 }
 0x73b   :  { %v1632_v59 = vpop.eup %1631  ;;  %1431 = vst [vmem:[%s2084_s3 + $0x30] sm:$0xff] %v1630_v57  ;;  %1651 = vpow2.f32 %v1337_v17  ;;  %v1294_v52 = vsub.f32 0.0, %v1190_v43 }
 0x73c   :  { %v1634_v62 = vpop.eup %1633  ;;  %1430 = vst [vmem:[%s2084_s3 + $0x28] sm:$0xff] %v1632_v59  ;;  %1653 = vpow2.f32 %v1341_v53  ;;  %v1296_v54 = vsub.f32 0.0, %v1263_v46 }
 0x73d   :  { %v1636_v2 = vpop.eup %1635  ;;  %1432 = vst [vmem:[%s2084_s3 + $0x38] sm:$0xff] %v1634_v62  ;;  %1655 = vpow2.f32 %v1339_v55 }
 0x73e   :  { %v1638_v4 = vpop.eup %1637  ;;  %1433 = vst [vmem:[%s2084_s3 + $0x40] sm:$0xff] %v1636_v2  ;;  %1657 = vpow2.f32 %v1343_v1  ;;  %v1355_v1 = vmul.f32 1.442695, %v1294_v52  ;;  %v1359_v59 = vmul.f32 1.442695, %v1296_v54 }
 0x73f   :  { %v1640_v6 = vpop.eup %1639  ;;  %1435 = vst [vmem:[%s2084_s3 + $0x50] sm:$0xff] %v1638_v4  ;;  %1659 = vpow2.f32 %v1329_v60 }
 0x740   :  { %v1642_v8 = vpop.eup %1641  ;;  %1434 = vst [vmem:[%s2084_s3 + $0x48] sm:$0xff] %v1640_v6  ;;  %1661 = vpow2.f32 %v1331_v63 }
 0x741   :  { %v1644_v10 = vpop.eup %1643  ;;  %1436 = vst [vmem:[%s2084_s3 + $0x58] sm:$0xff] %v1642_v8  ;;  %1663 = vpow2.f32 %v1333_v3 }
 0x742   :  { %v1646_v11 = vpop.eup %1645  ;;  %1437 = vst [vmem:[%s2084_s3 + $0x60] sm:$0xff] %v1644_v10  ;;  %1665 = vpow2.f32 %v1335_v5 }
 0x743   :  { %v1648_v12 = vpop.eup %1647  ;;  %v1375_v13 = vadd.f32 1.0, %v1646_v11  ;;  %1667 = vpow2.f32 %v1345_v7 }
 0x744   :  { %v1650_v14 = vpop.eup %1649  ;;  %v1374_v16 = vadd.f32 1.0, %v1648_v12  ;;  %1669 = vpow2.f32 %v1349_v9 }
 0x745   :  { %v1652_v15 = vpop.eup %1651  ;;  %1671 = vrcp.f32 %v1375_v13  ;;  %v1376_v18 = vadd.f32 1.0, %v1650_v14 }
 0x746   :  { %v1654_v22 = vpop.eup %1653  ;;  %1673 = vrcp.f32 %v1374_v16  ;;  %v1381_v25 = vadd.f32 1.0, %v1652_v15 }
 0x747   :  { %v1656_v27 = vpop.eup %1655  ;;  %1675 = vrcp.f32 %v1376_v18  ;;  %v1383_v31 = vadd.f32 1.0, %v1654_v22 }
 0x748   :  { %v1658_v33 = vpop.eup %1657  ;;  %1677 = vrcp.f32 %v1381_v25  ;;  %v1382_v34 = vadd.f32 1.0, %v1656_v27 }
 0x749   :  { %v1660_v38 = vpop.eup %1659  ;;  %1679 = vrcp.f32 %v1383_v31  ;;  %v1384_v39 = vadd.f32 1.0, %v1658_v33 }
 0x74a   :  { %v1662_v41 = vpop.eup %1661  ;;  %1681 = vrcp.f32 %v1382_v34  ;;  %v1377_v23 = vadd.f32 1.0, %v1660_v38 }
 0x74b   :  { %v1664_v44 = vpop.eup %1663  ;;  %1683 = vrcp.f32 %v1384_v39  ;;  %v1378_v45 = vadd.f32 1.0, %v1662_v41 }
 0x74c   :  { %v1666_v47 = vpop.eup %1665  ;;  %v1379_v19 = vadd.f32 1.0, %v1664_v44  ;;  %1685 = vrcp.f32 %v1377_v23 }
 0x74d   :  { %v1668_v48 = vpop.eup %1667  ;;  %v1380_v49 = vadd.f32 1.0, %v1666_v47  ;;  %1687 = vrcp.f32 %v1378_v45 }
 0x74e   :  { %v1670_v17 = vpop.eup %1669  ;;  %1689 = vrcp.f32 %v1379_v19  ;;  %v1385_v50 = vadd.f32 1.0, %v1668_v48 }
 0x74f   :  { %v1672_v35 = vpop.eup %1671  ;;  %1691 = vrcp.f32 %v1380_v49  ;;  %v1387_v53 = vadd.f32 1.0, %v1670_v17 }
 0x750   :  { %v1674_v21 = vpop.eup %1673  ;;  %1439 = vst [vmem:[%s2084_s3 + $0x70] sm:$0xff] %v1672_v35  ;;  %1693 = vrcp.f32 %v1385_v50 }
 0x751   :  { %v1676_v55 = vpop.eup %1675  ;;  %1438 = vst [vmem:[%s2084_s3 + $0x68] sm:$0xff] %v1674_v21  ;;  %1695 = vrcp.f32 %v1387_v53 }
 0x752   :  { %v1678_v57 = vpop.eup %1677  ;;  %1440 = vst [vmem:[%s2084_s3 + $0x78] sm:$0xff] %v1676_v55  ;;  %1697 = vpow2.f32 %v1347_v51 }
 0x753   :  { %v1680_v58 = vpop.eup %1679  ;;  %1445 = vst [vmem:[%s2084_s3 + $0xa0] sm:$0xff] %v1678_v57  ;;  %1699 = vpow2.f32 %v1351_v20 }
 0x754   :  { %v1682_v60 = vpop.eup %1681  ;;  %1447 = vst [vmem:[%s2084_s3 + $0xb0] sm:$0xff] %v1680_v58  ;;  %1701 = vpow2.f32 %v1353_v36 }
 0x755   :  { %v1684_v61 = vpop.eup %1683  ;;  %1446 = vst [vmem:[%s2084_s3 + $0xa8] sm:$0xff] %v1682_v60  ;;  %1703 = vpow2.f32 %v1357_v56 }
 0x756   :  { %v1686_v62 = vpop.eup %1685  ;;  %1448 = vst [vmem:[%s2084_s3 + $0xb8] sm:$0xff] %v1684_v61  ;;  %1705 = vpow2.f32 %v1355_v1 }
 0x757   :  { %v1688_v63 = vpop.eup %1687  ;;  %1441 = vst [vmem:[%s2084_s3 + $0x80] sm:$0xff] %v1686_v62  ;;  %1707 = vpow2.f32 %v1359_v59 }
 0x758   :  { %v1690_v0 = vpop.eup %1689  ;;  %1442 = vst [vmem:[%s2084_s3 + $0x88] sm:$0xff] %v1688_v63 }
 0x759   :  { %v1692_v2 = vpop.eup %1691  ;;  %1443 = vst [vmem:[%s2084_s3 + $0x90] sm:$0xff] %v1690_v0 }
 0x75a   :  { %v1694_v3 = vpop.eup %1693  ;;  %1444 = vst [vmem:[%s2084_s3 + $0x98] sm:$0xff] %v1692_v2 }
 0x75b   :  { %v1696_v4 = vpop.eup %1695  ;;  %1449 = vst [vmem:[%s2084_s3 + $0xc0] sm:$0xff] %v1694_v3 }
 0x75c   :  { %v1698_v5 = vpop.eup %1697  ;;  %1451 = vst [vmem:[%s2084_s3 + $0xd0] sm:$0xff] %v1696_v4 }
 0x75d   :  { %v1700_v6 = vpop.eup %1699  ;;  %v1386_v7 = vadd.f32 1.0, %v1698_v5 }
 0x75e   :  { %v1702_v8 = vpop.eup %1701  ;;  %v1388_v9 = vadd.f32 1.0, %v1700_v6 }
 0x75f   :  { %v1704_v10 = vpop.eup %1703  ;;  %1709 = vrcp.f32 %v1386_v7  ;;  %v1389_v11 = vadd.f32 1.0, %v1702_v8 }
 0x760   :  { %v1706_v12 = vpop.eup %1705  ;;  %1711 = vrcp.f32 %v1388_v9  ;;  %v1391_v13 = vadd.f32 1.0, %v1704_v10 }
 0x761   :  { %v1708_v14 = vpop.eup %1707  ;;  %1713 = vrcp.f32 %v1389_v11  ;;  %v1390_v16 = vadd.f32 1.0, %v1706_v12 }
 0x762   :  { %1715 = vrcp.f32 %v1391_v13  ;;  %v1392_v15 = vadd.f32 1.0, %v1708_v14 }
 0x763   :  { %1717 = vrcp.f32 %v1390_v16 }
 0x764   :  { %1719 = vrcp.f32 %v1392_v15 }
 0x769   :  { %v1710_v18 = vpop.eup %1709 }
 0x76a   :  { %v1712_v22 = vpop.eup %1711  ;;  %1450 = vst [vmem:[%s2084_s3 + $0xc8] sm:$0xff] %v1710_v18 }
 0x76b   :  { %v1714_v25 = vpop.eup %1713  ;;  %1452 = vst [vmem:[%s2084_s3 + $0xd8] sm:$0xff] %v1712_v22 }
 0x76c   :  { %v1716_v26 = vpop.eup %1715  ;;  %1453 = vst [vmem:[%s2084_s3 + $0xe0] sm:$0xff] %v1714_v25 }
 0x76d   :  { %v1718_v27 = vpop.eup %1717  ;;  %1455 = vst [vmem:[%s2084_s3 + $0xf0] sm:$0xff] %v1716_v26 }
 0x76e   :  { %v1720_v28 = vpop.eup %1719  ;;  %1454 = vst [vmem:[%s2084_s3 + $0xe8] sm:$0xff] %v1718_v27 }
 0x76f   :  { %1456 = vst [vmem:[%s2084_s3 + $0xf8] sm:$0xff] %v1720_v28 }

</bundles_post_ra>
